<compile_context>
chip_gen: v6e
topology: v6e:2x2x1
jax: 0.10.0
libtpu: 0.0.40
codegen_flags: <defaults>
</compile_context>

<pallas_src>
import math

import jax
import jax.numpy as jnp
from jax.experimental import pallas as pl
from jax.experimental.pallas import tpu as pltpu

H1_PAD = 128  # fc1 output width (orig 100) padded to lane width
H2_PAD = 256  # fc2 output width (orig 200) padded to lane width


def _round_up(n, m):
    return (n + m - 1) // m * m


def _rtnet_kernel(x_ref, w1_ref, b1_ref, w2_ref, b2_ref, w3_ref, b3_ref, o_ref):
    """Fused 3-layer MLP over one (TILE_B, in_dim) row tile.

    Weights/biases are VMEM-resident across grid steps. MXU matmuls accumulate
    in f32; bias-add/ReLU run in f32 on the VPU; activations are cast back to
    the weight dtype (bf16 fast path) before the next MXU op.
    """
    cdt = w1_ref.dtype  # MXU input dtype (bf16 fast path or f32)
    x = x_ref[...].astype(cdt)

    h1 = jnp.dot(x, w1_ref[...], preferred_element_type=jnp.float32) + b1_ref[...]
    h1 = jnp.maximum(h1, 0.0).astype(cdt)

    h2 = jnp.dot(h1, w2_ref[...], preferred_element_type=jnp.float32) + b2_ref[...]
    h2 = jnp.maximum(h2, 0.0).astype(cdt)

    out = jnp.dot(h2, w3_ref[...], preferred_element_type=jnp.float32) + b3_ref[...]
    o_ref[...] = out.astype(o_ref.dtype)


def init_rtnet_params_torch(key, input_dim, output_dim):
    """PyTorch nn.Linear-style params: W of shape (out, in), b of shape (out,),
    init U(-1/sqrt(fan_in), 1/sqrt(fan_in)) — matches RTnet's default init."""
    dims = [(input_dim, 100), (100, 200), (200, output_dim)]
    params = {}
    for i, (fan_in, fan_out) in enumerate(dims, start=1):
        key, kw, kb = jax.random.split(key, 3)
        bound = 1.0 / math.sqrt(fan_in)
        params[f"W{i}"] = jax.random.uniform(
            kw, (fan_out, fan_in), jnp.float32, minval=-bound, maxval=bound)
        params[f"b{i}"] = jax.random.uniform(
            kb, (fan_out,), jnp.float32, minval=-bound, maxval=bound)
    return params


def prepare_params(torch_params, compute_dtype=jnp.bfloat16):
    """Transpose to (in, out), zero-pad hidden dims to 128/256 and the output
    dim to a multiple of 128, cast weights to `compute_dtype` (MXU inputs).
    Zero padding + ReLU(0)=0 keeps the forward pass numerically identical."""
    W1, b1 = torch_params["W1"], torch_params["b1"]
    W2, b2 = torch_params["W2"], torch_params["b2"]
    W3, b3 = torch_params["W3"], torch_params["b3"]
    in_dim = W1.shape[1]
    out_dim = W3.shape[0]
    out_pad = _round_up(out_dim, 128)

    def pad2(a, rows, cols):
        return jnp.pad(a, ((0, rows - a.shape[0]), (0, cols - a.shape[1])))

    return {
        "w1": pad2(W1.T, in_dim, H1_PAD).astype(compute_dtype),
        "b1": jnp.pad(b1, (0, H1_PAD - b1.shape[0])).reshape(1, H1_PAD).astype(jnp.float32),
        "w2": pad2(W2.T, H1_PAD, H2_PAD).astype(compute_dtype),
        "b2": jnp.pad(b2, (0, H2_PAD - b2.shape[0])).reshape(1, H2_PAD).astype(jnp.float32),
        "w3": pad2(W3.T, H2_PAD, out_pad).astype(compute_dtype),
        "b3": jnp.pad(b3, (0, out_pad - out_dim)).reshape(1, out_pad).astype(jnp.float32),
        "out_dim": out_dim,
    }


def rtnet_forward(x, params, *, tile_b=512):
    """x: (B, input_dim) float array. params: output of prepare_params()."""
    w1, b1 = params["w1"], params["b1"]
    w2, b2 = params["w2"], params["b2"]
    w3, b3 = params["w3"], params["b3"]
    out_dim = params["out_dim"]
    out_pad = w3.shape[1]
    B, in_dim = x.shape

    # Batch tiling: tile must be a multiple of 8 sublanes; pad B up to a whole
    # number of tiles (padded rows compute garbage that is sliced away).
    tile_b = max(8, min(tile_b, _round_up(B, 8)))
    b_pad = _round_up(B, tile_b)
    if b_pad != B:
        x = jnp.pad(x, ((0, b_pad - B), (0, 0)))
    x = x.astype(w1.dtype)  # bf16 fast path halves the x-stream DMA bytes
    grid = (b_pad // tile_b,)

    def resident(shape):
        # Same block every grid step -> stays resident in VMEM (no re-DMA).
        return pl.BlockSpec(shape, lambda i: (0, 0))

    out = pl.pallas_call(
        _rtnet_kernel,
        out_shape=jax.ShapeDtypeStruct((b_pad, out_pad), jnp.float32),
        grid=grid,
        in_specs=[
            pl.BlockSpec((tile_b, in_dim), lambda i: (i, 0)),
            resident(w1.shape), resident(b1.shape),
            resident(w2.shape), resident(b2.shape),
            resident(w3.shape), resident(b3.shape),
        ],
        out_specs=pl.BlockSpec((tile_b, out_pad), lambda i: (i, 0)),
        compiler_params=pltpu.CompilerParams(
            dimension_semantics=("parallel",),  # megacore sharding on v7x
        ),
    )(x, w1, b1, w2, b2, w3, b3)

    return out[:B, :out_dim]


def rtnet_reference(x, torch_params):
    """Pure-JAX reference mirroring the PyTorch forward (f32 end to end)."""
    h1 = jnp.maximum(x @ torch_params["W1"].T + torch_params["b1"], 0.0)
    h2 = jnp.maximum(h1 @ torch_params["W2"].T + torch_params["b2"], 0.0)
    return h2 @ torch_params["W3"].T + torch_params["b3"]


if __name__ == "__main__":
    key = jax.random.PRNGKey(0)
    batch, input_dim, output_dim = 8, 32, 16

    kx, kp = jax.random.split(key)
    x = jax.random.normal(kx, (batch, input_dim), jnp.float32)
    torch_params = init_rtnet_params_torch(kp, input_dim, output_dim)
    ref = rtnet_reference(x, torch_params)

    # f32 path: exactness check against the reference.
    params_f32 = prepare_params(torch_params, compute_dtype=jnp.float32)
    out_f32 = jax.block_until_ready(rtnet_forward(x, params_f32))
    assert out_f32.shape == (batch, output_dim)
    assert jnp.allclose(out_f32, ref, atol=5e-4, rtol=5e-4)

    # bf16 fast path (MXU-native on v6e/v7x): relaxed tolerance.
    params_bf16 = prepare_params(torch_params, compute_dtype=jnp.bfloat16)
    out_bf16 = jax.block_until_ready(rtnet_forward(x, params_bf16))
    assert out_bf16.shape == (batch, output_dim)
    assert jnp.allclose(out_bf16, ref, atol=5e-2, rtol=5e-2)

    print("KERNEL_OK")
</pallas_src>

<mosaic_0001>
module attributes {stable_mosaic.version = 11 : i64} {
  func.func @_rtnet_kernel(%arg0: i32, %arg1: memref<8x32xf32, #tpu.memory_space<vmem>>, %arg2: memref<32x128xf32, #tpu.memory_space<vmem>>, %arg3: memref<1x128xf32, #tpu.memory_space<vmem>>, %arg4: memref<128x256xf32, #tpu.memory_space<vmem>>, %arg5: memref<1x256xf32, #tpu.memory_space<vmem>>, %arg6: memref<256x128xf32, #tpu.memory_space<vmem>>, %arg7: memref<1x128xf32, #tpu.memory_space<vmem>>, %arg8: memref<8x128xf32, #tpu.memory_space<vmem>>) attributes {dimension_semantics = [#tpu.dimension_semantics<parallel>], iteration_bounds = array<i64: 1>, scalar_prefetch = 0 : i64, scratch_operands = 0 : i64, tpu.core_type = #tpu.core_type<tc>, window_params = [{transform_indices = @transform_0, window_bounds = array<i64: 8, 32>}, {pipeline_mode = #tpu.pipeline_mode<synchronous>, transform_indices = @transform_1, window_bounds = array<i64: 32, 128>}, {pipeline_mode = #tpu.pipeline_mode<synchronous>, transform_indices = @transform_2, window_bounds = array<i64: 1, 128>}, {pipeline_mode = #tpu.pipeline_mode<synchronous>, transform_indices = @transform_3, window_bounds = array<i64: 128, 256>}, {pipeline_mode = #tpu.pipeline_mode<synchronous>, transform_indices = @transform_4, window_bounds = array<i64: 1, 256>}, {pipeline_mode = #tpu.pipeline_mode<synchronous>, transform_indices = @transform_5, window_bounds = array<i64: 256, 128>}, {pipeline_mode = #tpu.pipeline_mode<synchronous>, transform_indices = @transform_6, window_bounds = array<i64: 1, 128>}, {transform_indices = @transform_7, window_bounds = array<i64: 8, 128>}]} {
    %c0 = arith.constant 0 : index
    %c0_0 = arith.constant 0 : index
    %0 = vector.load %arg1[%c0, %c0_0] : memref<8x32xf32, #tpu.memory_space<vmem>>, vector<8x32xf32>
    %c0_1 = arith.constant 0 : index
    %c0_2 = arith.constant 0 : index
    %1 = vector.load %arg2[%c0_1, %c0_2] : memref<32x128xf32, #tpu.memory_space<vmem>>, vector<32x128xf32>
    %cst = arith.constant dense<0.000000e+00> : vector<8x128xf32>
    %2 = tpu.matmul %0, %1, %cst {dimension_numbers = #tpu.dot_dimension_numbers<[1], [0], [0], [1], [0, 0, 1, 1], [], []>} : vector<8x32xf32>, vector<32x128xf32>, vector<8x128xf32> -> vector<8x128xf32>
    %c0_3 = arith.constant 0 : index
    %c0_4 = arith.constant 0 : index
    %3 = vector.load %arg3[%c0_3, %c0_4] : memref<1x128xf32, #tpu.memory_space<vmem>>, vector<1x128xf32>
    %4 = vector.broadcast %3 : vector<1x128xf32> to vector<8x128xf32>
    %5 = arith.addf %2, %4 : vector<8x128xf32>
    %cst_5 = arith.constant 0.000000e+00 : f32
    %6 = vector.broadcast %cst_5 : f32 to vector<8x128xf32>
    %7 = arith.maximumf %5, %6 : vector<8x128xf32>
    %c0_6 = arith.constant 0 : index
    %c0_7 = arith.constant 0 : index
    %8 = vector.load %arg4[%c0_6, %c0_7] : memref<128x256xf32, #tpu.memory_space<vmem>>, vector<128x256xf32>
    %cst_8 = arith.constant dense<0.000000e+00> : vector<8x256xf32>
    %9 = tpu.matmul %7, %8, %cst_8 {dimension_numbers = #tpu.dot_dimension_numbers<[1], [0], [0], [1], [0, 0, 1, 1], [], []>} : vector<8x128xf32>, vector<128x256xf32>, vector<8x256xf32> -> vector<8x256xf32>
    %c0_9 = arith.constant 0 : index
    %c0_10 = arith.constant 0 : index
    %10 = vector.load %arg5[%c0_9, %c0_10] : memref<1x256xf32, #tpu.memory_space<vmem>>, vector<1x256xf32>
    %11 = vector.broadcast %10 : vector<1x256xf32> to vector<8x256xf32>
    %12 = arith.addf %9, %11 : vector<8x256xf32>
    %cst_11 = arith.constant 0.000000e+00 : f32
    %13 = vector.broadcast %cst_11 : f32 to vector<8x256xf32>
    %14 = arith.maximumf %12, %13 : vector<8x256xf32>
    %c0_12 = arith.constant 0 : index
    %c0_13 = arith.constant 0 : index
    %15 = vector.load %arg6[%c0_12, %c0_13] : memref<256x128xf32, #tpu.memory_space<vmem>>, vector<256x128xf32>
    %cst_14 = arith.constant dense<0.000000e+00> : vector<8x128xf32>
    %16 = tpu.matmul %14, %15, %cst_14 {dimension_numbers = #tpu.dot_dimension_numbers<[1], [0], [0], [1], [0, 0, 1, 1], [], []>} : vector<8x256xf32>, vector<256x128xf32>, vector<8x128xf32> -> vector<8x128xf32>
    %c0_15 = arith.constant 0 : index
    %c0_16 = arith.constant 0 : index
    %17 = vector.load %arg7[%c0_15, %c0_16] : memref<1x128xf32, #tpu.memory_space<vmem>>, vector<1x128xf32>
    %18 = vector.broadcast %17 : vector<1x128xf32> to vector<8x128xf32>
    %19 = arith.addf %16, %18 : vector<8x128xf32>
    %c0_17 = arith.constant 0 : index
    %c0_18 = arith.constant 0 : index
    %20 = vector.load %arg8[%c0_17, %c0_18] : memref<8x128xf32, #tpu.memory_space<vmem>>, vector<8x128xf32>
    tpu.vector_store %arg8[%c0_17, %c0_18], %19 {strides = array<i32>} : memref<8x128xf32, #tpu.memory_space<vmem>>, vector<8x128xf32>,
    return
  }
  func.func @transform_0(%arg0: i32) -> (i32, i32) {
    %c0_i32 = arith.constant 0 : i32
    %c0_i32_0 = arith.constant 0 : i32
    return %arg0, %c0_i32 : i32, i32
  }
  func.func @transform_1(%arg0: i32) -> (i32, i32) {
    %c0_i32 = arith.constant 0 : i32
    %c0_i32_0 = arith.constant 0 : i32
    %c0_i32_1 = arith.constant 0 : i32
    return %c0_i32, %c0_i32_0 : i32, i32
  }
  func.func @transform_2(%arg0: i32) -> (i32, i32) {
    %c0_i32 = arith.constant 0 : i32
    %c0_i32_0 = arith.constant 0 : i32
    %c0_i32_1 = arith.constant 0 : i32
    return %c0_i32, %c0_i32_0 : i32, i32
  }
  func.func @transform_3(%arg0: i32) -> (i32, i32) {
    %c0_i32 = arith.constant 0 : i32
    %c0_i32_0 = arith.constant 0 : i32
    %c0_i32_1 = arith.constant 0 : i32
    return %c0_i32, %c0_i32_0 : i32, i32
  }
  func.func @transform_4(%arg0: i32) -> (i32, i32) {
    %c0_i32 = arith.constant 0 : i32
    %c0_i32_0 = arith.constant 0 : i32
    %c0_i32_1 = arith.constant 0 : i32
    return %c0_i32, %c0_i32_0 : i32, i32
  }
  func.func @transform_5(%arg0: i32) -> (i32, i32) {
    %c0_i32 = arith.constant 0 : i32
    %c0_i32_0 = arith.constant 0 : i32
    %c0_i32_1 = arith.constant 0 : i32
    return %c0_i32, %c0_i32_0 : i32, i32
  }
  func.func @transform_6(%arg0: i32) -> (i32, i32) {
    %c0_i32 = arith.constant 0 : i32
    %c0_i32_0 = arith.constant 0 : i32
    %c0_i32_1 = arith.constant 0 : i32
    return %c0_i32, %c0_i32_0 : i32, i32
  }
  func.func @transform_7(%arg0: i32) -> (i32, i32) {
    %c0_i32 = arith.constant 0 : i32
    %c0_i32_0 = arith.constant 0 : i32
    return %arg0, %c0_i32 : i32, i32
  }
}

</mosaic_0001>

<bundles_post_ra>
// kernel: tpu_custom_call.1
= control target key start
LH: loop header
LB: loop body
LE: loop exit
PB: predicated region body
PF: predicated region fallthrough
CT: control target
= control target key end

     0   :  { %12 = vsyncpa [#allocation3], 0  ;;  %s665_s0 = inlined_call_operand.hbm [shape: f32[8,32], index: 0, kind: input, shape index: {}]   ;;  %s666_s1 = inlined_call_operand.hbm [shape: f32[32,128], index: 1, kind: input, shape index: {}]   ;;  %s667_s2 = inlined_call_operand.vmem [shape: f32[1,128], index: 2, kind: input, shape index: {}]   ;;  %s668_s3 = inlined_call_operand.hbm [shape: f32[128,256], index: 3, kind: input, shape index: {}]   ;;  %s669_s4 = inlined_call_operand.vmem [shape: f32[1,256], index: 4, kind: input, shape index: {}]   ;;  %s670_s5 = inlined_call_operand.hbm [shape: f32[256,128], index: 5, kind: input, shape index: {}]   ;;  %s671_s6 = inlined_call_operand.vmem [shape: f32[1,128], index: 6, kind: input, shape index: {}]   ;;  %s672_s7 = inlined_call_operand.hbm [shape: f32[8,128], index: 7, kind: output, shape index: {}]  }
   0x1   :  { %13 = vsyncpa [#allocation6], 0 }
   0x2   :  { %14 = vsyncpa [#allocation9], 0 }
   0x3   :  { %15 = vsyncpa [#allocation4], 0  ;;  %s584_s24 = smov [#allocation5]  }
   0x4   :  { %s31_s25 = sshll.u32 %s584_s24, 4  ;;  %s32_s25 = int_to_ptr.vmem [resolvable:$true] %s31_s25 }
   0x5   :  { %s484_s26 = scalar_lea.vmem %s32_s25, 512  ;;  %p489_p1 = scmp.lt.s32.totalorder %s32_s25, %s32_s25 }
   0x6   :  { %p485_p0 = scmp.ne.s32.totalorder %s32_s25, %s484_s26  ;;  %p490_p2 = scmp.lt.s32.totalorder %s484_s26, %s484_s26 }
   0x8   :  { %p491_p3 = por %p490_p2, %p489_p1 }
   0xa   :  { %p492_p4 = pnand %p491_p3, %p485_p0 }
   0xc   :  { %495 = shalt.err (!%p492_p4)
}
   0xd   :  { %s585_s27 = smov 128   ;;  %s586_s28 = smov 8  }
   0xe   :  { %37 = dma.hbm_to_vmem [thread:$0]  %s666_s1, 512, %s32_s25, [#allocation6], %s585_s27, %s585_s27, %s586_s28  }
   0xf   :  { %s587_s8 = smov [#allocation2]   ;;  %s588_s10 = smov [#allocation7]  }
  0x10   :  { %s22_s9 = sshll.u32 %s587_s8, 4  ;;  %s45_s11 = sshll.u32 %s588_s10, 4  ;;  %s23_s9 = int_to_ptr.vmem [resolvable:$true] %s22_s9  ;;  %s46_s11 = int_to_ptr.vmem [resolvable:$true] %s45_s11 }
  0x11   :  { %s504_s12 = scalar_lea.vmem %s23_s9, 128  ;;  %p509_p6 = scmp.lt.s32.totalorder %s23_s9, %s23_s9 }
  0x12   :  { %p505_p5 = scmp.ne.s32.totalorder %s23_s9, %s504_s12  ;;  %p510_p7 = scmp.lt.s32.totalorder %s504_s12, %s504_s12 }
  0x14   :  { %p511_p8 = por %p510_p7, %p509_p6 }
  0x16   :  { %p512_p9 = pnand %p511_p8, %p505_p5 }
  0x18   :  { %515 = shalt.err (!%p512_p9)
}
  0x19   :  { %25 = dma.hbm_to_vmem [thread:$0]  %s665_s0, 128, %s23_s9, [#allocation3]  }
  0x1a   :  { %s524_s15 = scalar_lea.vmem %s46_s11, 4096  ;;  %p529_p11 = scmp.lt.s32.totalorder %s46_s11, %s46_s11 }
  0x1b   :  { %p525_p10 = scmp.ne.s32.totalorder %s46_s11, %s524_s15  ;;  %p530_p12 = scmp.lt.s32.totalorder %s524_s15, %s524_s15 }
  0x1d   :  { %p531_p13 = por %p530_p12, %p529_p11 }
  0x1f   :  { %p532_p0 = pnand %p531_p13, %p525_p10 }
  0x21   :  { %535 = shalt.err (!%p532_p0)
}
  0x22   :  { %s589_s1 = smov 256   ;;  %s590_s16 = smov 16  }
  0x23   :  { %51 = dma.hbm_to_vmem [thread:$0]  %s668_s3, 4096, %s46_s11, [#allocation6], %s589_s1, %s589_s1, %s590_s16  }
  0x24   :  { %s591_s19 = smov [#allocation8]  }
  0x25   :  { %s59_s20 = sshll.u32 %s591_s19, 4  ;;  %s60_s20 = int_to_ptr.vmem [resolvable:$true] %s59_s20 }
  0x26   :  { %s544_s21 = scalar_lea.vmem %s60_s20, 4096  ;;  %p549_p2 = scmp.lt.s32.totalorder %s60_s20, %s60_s20 }
  0x27   :  { %p545_p1 = scmp.ne.s32.totalorder %s60_s20, %s544_s21  ;;  %p550_p3 = scmp.lt.s32.totalorder %s544_s21, %s544_s21 }
  0x29   :  { %p551_p4 = por %p550_p3, %p549_p2 }
  0x2b   :  { %p552_p5 = pnand %p551_p4, %p545_p1 }
  0x2d   :  { %555 = shalt.err (!%p552_p5)
}
  0x2e   :  { %65 = dma.hbm_to_vmem [thread:$0]  %s670_s5, 4096, %s60_s20, [#allocation9], %s585_s27, %s585_s27, %s586_s28  }
  0x2f   :  { %576 = dma.done.wait [#allocation3], 128  }
  0x30   :  { %577 = vsyncadd [#allocation3], 4294967168 }
  0x31   :  { %578 = dma.done.wait [#allocation6], 4608  }
  0x32   :  { %579 = vsyncadd [#allocation6], 4294962688 }
  0x33   :  { %580 = dma.done.wait [#allocation9], 4096  }
  0x34   :  { %581 = vsyncadd [#allocation9], 4294963200  ;;  %v592_v0 = vmov 0.0   ;;  %vm593_vm0 = vmmov 0   ;;  %v84_v1 = vld [vmem:[#allocation5 + $0x18] sm:$0xff]  ;;  %v83_v2 = vld [vmem:[#allocation5 + $0x10] sm:$0xff] }
  0x35   :  { %454 = vmatprep.subr.mxu0 %v592_v0  ;;  %462 = vmatprep.mubr.msk.f32.mxu0 %vm593_vm0, %v592_v0  ;;  %v82_v3 = vld [vmem:[#allocation5 + $0x8] sm:$0xff]  ;;  %v198_v4 = vld [vmem:[#allocation7 + $0xf8] sm:$0xff]  ;;  %v197_v5 = vld [vmem:[#allocation7 + $0xf0] sm:$0xff]  ;;  %vm92_vm1 = vcmask 261120   ;;  %s594_s26 = smov [#allocation10]  }
  0x36   :  { %275 = vmatprep.mubr.f32.mxu1 %v592_v0  ;;  %455 = vmatpush3.msra.mxu0 %v84_v1  ;;  %v196_v6 = vld [vmem:[#allocation7 + $0xe8] sm:$0xff]  ;;  %v195_v7 = vld [vmem:[#allocation7 + $0xe0] sm:$0xff]  ;;  %v194_v8 = vld [vmem:[#allocation7 + $0xd8] sm:$0xff]  ;;  %s400_s27 = sshll.u32 %s594_s26, 4  ;;  %s401_s27 = int_to_ptr.vmem [resolvable:$true] %s400_s27 }
  0x37   :  { %456 = vmatprep.subr.mxu0 %v592_v0  ;;  %211 = vmatprep.subr.mxu1 %v198_v4  ;;  %v81_v9 = vld [vmem:[#allocation5] sm:$0xff]  ;;  %v193_v10 = vld [vmem:[#allocation7 + $0xd0] sm:$0xff]  ;;  %v80_v11 = vld [vmem:[#allocation2] sm:$0xff]  ;;  %p561_p7 = scmp.lt.s32.totalorder %s401_s27, %s401_s27 }
  0x38   :  { %457 = vmatpush3.msra.mxu0 %v83_v2  ;;  %212 = vmatpush1.msra.mxu1 %v197_v5  ;;  %v192_v12 = vld [vmem:[#allocation7 + $0xc8] sm:$0xff]  ;;  %v191_v13 = vld [vmem:[#allocation7 + $0xc0] sm:$0xff]  ;;  %v190_v14 = vld [vmem:[#allocation7 + $0xb8] sm:$0xff] }
  0x39   :  { %458 = vmatprep.subr.mxu0 %v592_v0  ;;  %213 = vmatprep.subr.mxu1 %v196_v6  ;;  %v189_v15 = vld [vmem:[#allocation7 + $0xb0] sm:$0xff]  ;;  %v188_v16 = vld [vmem:[#allocation7 + $0xa8] sm:$0xff]  ;;  %v187_v17 = vld [vmem:[#allocation7 + $0xa0] sm:$0xff] }
  0x3a   :  { %459 = vmatpush3.msra.mxu0 %v82_v3  ;;  %214 = vmatpush1.msra.mxu1 %v195_v7  ;;  %v186_v18 = vld [vmem:[#allocation7 + $0x98] sm:$0xff]  ;;  %v185_v19 = vld [vmem:[#allocation7 + $0x90] sm:$0xff]  ;;  %v184_v20 = vld [vmem:[#allocation7 + $0x88] sm:$0xff] }
  0x3b   :  { %460 = vmatprep.subr.mxu0 %v592_v0  ;;  %215 = vmatprep.subr.mxu1 %v194_v8  ;;  %v183_v21 = vld [vmem:[#allocation7 + $0x80] sm:$0xff]  ;;  %v182_v22 = vld [vmem:[#allocation7 + $0x78] sm:$0xff]  ;;  %v181_v23 = vld [vmem:[#allocation7 + $0x70] sm:$0xff] }
  0x3c   :  { %461 = vmatpush3.msra.mxu0 %v81_v9  ;;  %216 = vmatpush1.msra.mxu1 %v193_v10  ;;  %v180_v24 = vld [vmem:[#allocation7 + $0x68] sm:$0xff]  ;;  %v179_v25 = vld [vmem:[#allocation7 + $0x60] sm:$0xff]  ;;  %v178_v26 = vld [vmem:[#allocation7 + $0x58] sm:$0xff] }
  0x3d   :  { %463 = vmatmul.mubr.msk.f32.vlgmr.msra.gmra.mxu0 %vm92_vm1, %v80_v11  ;;  %217 = vmatprep.subr.mxu1 %v192_v12  ;;  %v177_v27 = vld [vmem:[#allocation7 + $0x50] sm:$0xff]  ;;  %v176_v28 = vld [vmem:[#allocation7 + $0x48] sm:$0xff]  ;;  %v175_v29 = vld [vmem:[#allocation7 + $0x40] sm:$0xff]  ;;  %v201_v11 = vlaneseq }
  0x3e   :  { %218 = vmatpush1.msra.mxu1 %v191_v13  ;;  %v174_v30 = vld [vmem:[#allocation7 + $0x38] sm:$0xff]  ;;  %v173_v31 = vld [vmem:[#allocation7 + $0x30] sm:$0xff]  ;;  %v172_v32 = vld [vmem:[#allocation7 + $0x28] sm:$0xff] }
  0x3f   :  { %219 = vmatprep.subr.mxu1 %v190_v14  ;;  %v171_v33 = vld [vmem:[#allocation7 + $0x20] sm:$0xff]  ;;  %v170_v34 = vld [vmem:[#allocation7 + $0x18] sm:$0xff]  ;;  %v169_v35 = vld [vmem:[#allocation7 + $0x10] sm:$0xff]  ;;  %v202_v12 = vshrl.u32 %v201_v11, 7 }
  0x40   :  { %220 = vmatpush1.msra.mxu1 %v189_v15  ;;  %v168_v36 = vld [vmem:[#allocation7 + $0x8] sm:$0xff]  ;;  %v167_v37 = vld [vmem:[#allocation7] sm:$0xff]  ;;  %v315_v38 = vld [vmem:[#allocation8 + $0xf8] sm:$0xff] }
  0x41   :  { %221 = vmatprep.subr.mxu1 %v188_v16  ;;  %v299_v39 = vld [vmem:[#allocation8 + $0x78] sm:$0xff]  ;;  %v314_v40 = vld [vmem:[#allocation8 + $0xf0] sm:$0xff]  ;;  %419 = vmatprep.subr.mxu0 %v315_v38  ;;  %v313_v42 = vld [vmem:[#allocation8 + $0xe8] sm:$0xff]  ;;  %v203_v13 = vsub.s32 0, %v202_v12  ;;  %v207_v15 = vsub.s32 1, %v202_v12 }
  0x42   :  { %222 = vmatpush1.msra.mxu1 %v187_v17  ;;  %v298_v41 = vld [vmem:[#allocation8 + $0x70] sm:$0xff]  ;;  %420 = vmatpush3.msra.mxu0 %v299_v39  ;;  %v297_v43 = vld [vmem:[#allocation8 + $0x68] sm:$0xff]  ;;  %v312_v44 = vld [vmem:[#allocation8 + $0xe0] sm:$0xff] }
  0x43   :  { %223 = vmatprep.subr.mxu1 %v186_v18  ;;  %421 = vmatprep.subr.mxu0 %v314_v40  ;;  %v296_v45 = vld [vmem:[#allocation8 + $0x60] sm:$0xff]  ;;  %v311_v46 = vld [vmem:[#allocation8 + $0xd8] sm:$0xff]  ;;  %v310_v48 = vld [vmem:[#allocation8 + $0xd0] sm:$0xff] }
  0x44   :  { %224 = vmatpush1.msra.mxu1 %v185_v19  ;;  %422 = vmatpush3.msra.mxu0 %v298_v41  ;;  %v295_v47 = vld [vmem:[#allocation8 + $0x58] sm:$0xff]  ;;  %v294_v49 = vld [vmem:[#allocation8 + $0x50] sm:$0xff]  ;;  %v309_v50 = vld [vmem:[#allocation8 + $0xc8] sm:$0xff] }
  0x45   :  { %225 = vmatprep.subr.mxu1 %v184_v20  ;;  %423 = vmatprep.subr.mxu0 %v313_v42  ;;  %v293_v51 = vld [vmem:[#allocation8 + $0x48] sm:$0xff]  ;;  %v308_v52 = vld [vmem:[#allocation8 + $0xc0] sm:$0xff]  ;;  %v307_v54 = vld [vmem:[#allocation8 + $0xb8] sm:$0xff] }
  0x46   :  { %226 = vmatpush1.msra.mxu1 %v183_v21  ;;  %424 = vmatpush3.msra.mxu0 %v297_v43  ;;  %v292_v53 = vld [vmem:[#allocation8 + $0x40] sm:$0xff]  ;;  %v291_v55 = vld [vmem:[#allocation8 + $0x38] sm:$0xff]  ;;  %v306_v56 = vld [vmem:[#allocation8 + $0xb0] sm:$0xff] }
  0x47   :  { %227 = vmatprep.subr.mxu1 %v182_v22  ;;  %425 = vmatprep.subr.mxu0 %v312_v44  ;;  %v290_v57 = vld [vmem:[#allocation8 + $0x30] sm:$0xff]  ;;  %v305_v58 = vld [vmem:[#allocation8 + $0xa8] sm:$0xff]  ;;  %v304_v60 = vld [vmem:[#allocation8 + $0xa0] sm:$0xff] }
  0x48   :  { %228 = vmatpush1.msra.mxu1 %v181_v23  ;;  %426 = vmatpush3.msra.mxu0 %v296_v45  ;;  %v289_v59 = vld [vmem:[#allocation8 + $0x28] sm:$0xff]  ;;  %v288_v61 = vld [vmem:[#allocation8 + $0x20] sm:$0xff]  ;;  %v411_v62 = vld [vmem:[%s667_s2] ss:$0 sm:$0xff] }
  0x49   :  { %229 = vmatprep.subr.mxu1 %v180_v24  ;;  %427 = vmatprep.subr.mxu0 %v311_v46  ;;  %v303_v3 = vld [vmem:[#allocation8 + $0x98] sm:$0xff]  ;;  %v302_v5 = vld [vmem:[#allocation8 + $0x90] sm:$0xff]  ;;  %v301_v7 = vld [vmem:[#allocation8 + $0x88] sm:$0xff] }
  0x4a   :  { %230 = vmatpush1.msra.mxu1 %v179_v25  ;;  %428 = vmatpush3.msra.mxu0 %v295_v47  ;;  %v287_v4 = vld [vmem:[#allocation8 + $0x18] sm:$0xff]  ;;  %v286_v6 = vld [vmem:[#allocation8 + $0x10] sm:$0xff]  ;;  %v285_v8 = vld [vmem:[#allocation8 + $0x8] sm:$0xff] }
  0x4b   :  { %231 = vmatprep.subr.mxu1 %v178_v26  ;;  %429 = vmatprep.subr.mxu0 %v310_v48  ;;  %v300_v9 = vld [vmem:[#allocation8 + $0x80] sm:$0xff]  ;;  %v199_v14 = vld [vmem:[%s669_s4] sm:$0x3]  ;;  %s556_s4 = scalar_lea.vmem %s401_s27, 128 }
  0x4c   :  { %232 = vmatpush1.msra.mxu1 %v177_v27  ;;  %430 = vmatpush3.msra.mxu0 %v294_v49  ;;  %v284_v10 = vld [vmem:[#allocation8] sm:$0xff]  ;;  %v204_v16 = vrot.slane %v199_v14, %v203_v13  ;;  %v208_v17 = vrot.slane %v199_v14, %v207_v15  ;;  %v413_v25 = vld [vmem:[%s671_s6] ss:$0 sm:$0xff]  ;;  %p557_p6 = scmp.ne.s32.totalorder %s401_s27, %s556_s4  ;;  %p562_p8 = scmp.lt.s32.totalorder %s556_s4, %s556_s4 }
  0x4d   :  { %233 = vmatprep.subr.mxu1 %v176_v28  ;;  %431 = vmatprep.subr.mxu0 %v309_v50 }
  0x4e   :  { %234 = vmatpush1.msra.mxu1 %v175_v29  ;;  %432 = vmatpush3.msra.mxu0 %v293_v51  ;;  %p563_p9 = por %p562_p8, %p561_p7 }
  0x4f   :  { %235 = vmatprep.subr.mxu1 %v174_v30  ;;  %433 = vmatprep.subr.mxu0 %v308_v52 }
  0x50   :  { %236 = vmatpush1.msra.mxu1 %v173_v31  ;;  %434 = vmatpush3.msra.mxu0 %v292_v53  ;;  %p564_p10 = pnand %p563_p9, %p557_p6 }
  0x51   :  { %237 = vmatprep.subr.mxu1 %v172_v32  ;;  %435 = vmatprep.subr.mxu0 %v307_v54 }
  0x52   :  { %238 = vmatpush1.msra.mxu1 %v171_v33  ;;  %436 = vmatpush3.msra.mxu0 %v291_v55 }
  0x53   :  { %239 = vmatprep.subr.mxu1 %v170_v34  ;;  %437 = vmatprep.subr.mxu0 %v306_v56 }
  0x54   :  { %240 = vmatpush1.msra.mxu1 %v169_v35  ;;  %438 = vmatpush3.msra.mxu0 %v290_v57 }
  0x55   :  { %241 = vmatprep.subr.mxu1 %v168_v36  ;;  %439 = vmatprep.subr.mxu0 %v305_v58 }
  0x56   :  { %242 = vmatpush1.msra.mxu1 %v167_v37  ;;  %440 = vmatpush3.msra.mxu0 %v289_v59 }
  0x57   :  { %441 = vmatprep.subr.mxu0 %v304_v60 }
  0x58   :  { %442 = vmatpush3.msra.mxu0 %v288_v61 }
  0x59   :  { %443 = vmatprep.subr.mxu0 %v303_v3 }
  0x5a   :  { %444 = vmatpush3.msra.mxu0 %v287_v4 }
  0x5b   :  { %445 = vmatprep.subr.mxu0 %v302_v5 }
  0x5c   :  { %446 = vmatpush3.msra.mxu0 %v286_v6 }
  0x5d   :  { %447 = vmatprep.subr.mxu0 %v301_v7 }
  0x5e   :  { %448 = vmatpush3.msra.mxu0 %v285_v8 }
  0x5f   :  { %449 = vmatprep.subr.mxu0 %v300_v9 }
  0x60   :  { %450 = vmatpush3.msra.mxu0 %v284_v10 }
  0xfd   :  { %v162_v63 = vpop.f32.mrf.mxu0 }
  0xfe   :  { %v163_v0 = vadd.f32 %v411_v62, %v162_v63 }
  0xff   :  { %v464_v1 = vpop.f32.mrf.mxu0 }
 0x100   :  { %v166_v2 = vmax.f32 %v163_v0, 0.0 }
 0x102   :  { %276 = vmatmul.mubr.f32.vlgmr.msra.gmra.mxu1 %v166_v2 }
 0x1c2   :  { %v277_v18 = vpop.f32.mrf.mxu1 }
 0x1c3   :  { %v278_v19 = vadd.f32 %v277_v18, %v204_v16 }
 0x1c4   :  { %v279_v20 = vpop.f32.mrf.mxu1 }
 0x1c5   :  { %v280_v21 = vadd.f32 %v279_v20, %v208_v17  ;;  %v282_v23 = vmax.f32 %v278_v19, 0.0 }
 0x1c7   :  { %v283_v22 = vmax.f32 %v280_v21, 0.0 }
 0x1c9   :  { %387 = vmatprep.mubr.f32.mxu0 %v283_v22 }
 0x1ca   :  { %388 = vmatmul.mubr.f32.vlgmr.msra.gmra.mxu0 %v282_v23 }
 0x28a   :  { %v451_v24 = vpop.f32.mrf.mxu0 }
 0x28c   :  { %v452_v26 = vpop.f32.mrf.mxu0 }
 0x28d   :  { %v453_v27 = vadd.f32 %v452_v26, %v451_v24 }
 0x28f   :  { %v390_v28 = vadd.f32 %v453_v27, %v413_v25 }
 0x291   :  { %393 = vst [vmem:[#allocation10] sm:$0xff] %v390_v28 }
 0x292   :  { %567 = shalt.err (!%p564_p10)
}
 0x293   :  { %403 = dma.vmem_to_hbm [thread:$0]  %s401_s27, 128, %s672_s7, [#allocation4]  }
 0x294   :  { %582 = dma.done.wait [#allocation4], 128  }
 0x295   :  { %583 = vsyncadd [#allocation4], 4294967168 }
 0x296   :  { %407 = vsyncpa [#allocation3], 1 }
 0x297   :  { %408 = vsyncpa [#allocation6], 1 }
 0x298   :  { %409 = vsyncpa [#allocation9], 1 }
 0x299   :  { %410 = vsyncpa [#allocation4], 1 }

</bundles_post_ra>
